<compile_context>
chip_gen: v7x
topology: tpu7x:2x2x1
jax: 0.10.0
libtpu: 0.0.40
codegen_flags: <defaults>
</compile_context>

<pallas_src>
import functools

import jax
import jax.numpy as jnp
from jax.experimental import pallas as pl
from jax.experimental.pallas import tpu as pltpu

_LANES = 128
_MAX_TILE_ROWS = 4096   # 4096*128 samples/step -> 2 MiB per f32 logit-column block


def _round_up(x, m):
    return ((x + m - 1) // m) * m


def _focal_loss_kernel(x0_ref, x1_ref, t_ref, out_ref, *, alpha, gamma):
    # Lane-dense tiles: (tile_rows, 128). Cast per-tile in VMEM (VPU, cheap).
    x0 = x0_ref[...].astype(jnp.float32)
    x1 = x1_ref[...].astype(jnp.float32)
    tgt = t_ref[...].astype(jnp.int32)          # int8 -> int32 unpack

    is0 = tgt == 0
    # d = x_other - x_target without materializing x_t / x_o separately.
    diff = x1 - x0
    d = jnp.where(is0, diff, -diff)

    # CE = softplus(d) = max(d,0) + log(1+exp(-|d|)), numerically stable.
    e = jnp.exp(-jnp.abs(d))
    ce = jnp.maximum(d, 0.0) + jnp.log(1.0 + e)

    # 1 - pt = 1 - exp(-CE) = sigmoid(d) = where(d>=0, 1, e) / (1+e)
    # (exact division; avoids a third transcendental and the 1-pt cancellation).
    omp = jnp.where(d >= 0.0, 1.0, e) / (1.0 + e)

    at = jnp.where(is0, jnp.float32(alpha), jnp.float32(1.0 - alpha))

    g = float(gamma)
    if g.is_integer() and 0 <= int(g) <= 8:
        gi = int(g)
        if gi == 0:
            w = jnp.ones_like(omp)
        else:
            # Integer gamma (default 2): repeated VPU multiplies, no pow()/EUP.
            w = omp
            for _ in range(gi - 1):
                w = w * omp
    else:
        w = omp ** jnp.float32(g)

    f = at * w * ce
    f = jnp.where(tgt >= 0, f, 0.0)             # padded rows (tgt == -1) -> 0

    # One scalar partial sum per grid step, written to the resident SMEM output.
    out_ref[pl.program_id(0), 0] = jnp.sum(f)


def weighted_focal_loss(logits, targets, *, alpha=0.25, gamma=2):
    """logits: (N, 2) float (any dtype); targets: (N,) int in {0, 1}.

    Returns the scalar focal loss (f32), matching WeightedFocalLoss.forward
    with weights=None.
    """
    n, c = logits.shape
    if c != 2:
        raise ValueError(
            "WeightedFocalLoss uses alpha_vec=[alpha, 1-alpha]; only C == 2 "
            f"(binary classification) is supported, got C == {c}."
        )

    # Split columns -> lane-dense (rows, 128) slabs. Keep native logit dtype
    # (cast happens inside the kernel); targets travel as int8.
    rows = pl.cdiv(n, _LANES)
    # Round tile rows to 32 so the int8 target block satisfies (32, 128) tiling.
    tile_rows = min(_MAX_TILE_ROWS, _round_up(rows, 32))
    rows_pad = _round_up(rows, tile_rows)
    pad = rows_pad * _LANES - n

    x0 = jnp.pad(logits[:, 0], (0, pad)).reshape(rows_pad, _LANES)
    x1 = jnp.pad(logits[:, 1], (0, pad)).reshape(rows_pad, _LANES)
    tgt = jnp.pad(targets.astype(jnp.int8), (0, pad), constant_values=-1)
    tgt = tgt.reshape(rows_pad, _LANES)

    num_tiles = rows_pad // tile_rows
    kernel = functools.partial(
        _focal_loss_kernel, alpha=float(alpha), gamma=gamma
    )

    partials = pl.pallas_call(
        kernel,
        out_shape=jax.ShapeDtypeStruct((num_tiles, 1), jnp.float32),
        grid=(num_tiles,),
        in_specs=[
            pl.BlockSpec((tile_rows, _LANES), lambda i: (i, 0)),   # x0
            pl.BlockSpec((tile_rows, _LANES), lambda i: (i, 0)),   # x1
            pl.BlockSpec((tile_rows, _LANES), lambda i: (i, 0)),   # targets
        ],
        # Unblocked SMEM output: resident for the whole grid, one scalar
        # partial sum written per step, copied out once at the end.
        out_specs=pl.BlockSpec(memory_space=pltpu.SMEM),
        compiler_params=pltpu.CompilerParams(
            # Per-tile partials are independent, but the unblocked SMEM output
            # is shared across steps, so keep the axis "arbitrary".
            dimension_semantics=("arbitrary",),
            # Headroom for the double-buffered 2 MiB logit blocks (v5e/v6e/v7x
            # all have >= 64 MiB physical VMEM; budget here is ~9 MiB).
            vmem_limit_bytes=32 * 1024 * 1024,
        ),
    )(x0, x1, tgt)

    # Per-tile partial sums reduced (and mean-normalized) in f32 outside.
    return jnp.sum(partials) / jnp.float32(n)


def _reference(logits, targets, alpha=0.25, gamma=2):
    logits = logits.astype(jnp.float32)
    lse = jax.scipy.special.logsumexp(logits, axis=-1)
    ce = lse - jnp.take_along_axis(logits, targets[:, None], axis=-1)[:, 0]
    alpha_vec = jnp.array([alpha, 1.0 - alpha], jnp.float32)
    at = alpha_vec[targets]
    pt = jnp.exp(-ce)
    return jnp.mean(at * (1.0 - pt) ** gamma * ce)


if __name__ == "__main__":
    key = jax.random.PRNGKey(0)
    k1, k2 = jax.random.split(key)

    N, C = 256, 2                      # small binary-classification batch
    logits = jax.random.normal(k1, (N, C), dtype=jnp.float32)
    targets = jax.random.randint(k2, (N,), 0, C, dtype=jnp.int32)

    loss = weighted_focal_loss(logits, targets, alpha=0.25, gamma=2)
    loss = jax.block_until_ready(loss)

    ref = jax.block_until_ready(_reference(logits, targets))
    assert jnp.allclose(loss, ref, rtol=1e-5, atol=1e-6), (loss, ref)

    print("KERNEL_OK")
</pallas_src>

<mosaic_0001>
module attributes {stable_mosaic.version = 11 : i64} {
  func.func @_focal_loss_kernel(%arg0: i32, %arg1: memref<32x128xf32, #tpu.memory_space<vmem>>, %arg2: memref<32x128xf32, #tpu.memory_space<vmem>>, %arg3: memref<32x128xi8, #tpu.memory_space<vmem>>, %arg4: memref<1x1xf32, #tpu.memory_space<smem>>) attributes {dimension_semantics = [#tpu.dimension_semantics<arbitrary>], iteration_bounds = array<i64: 1>, scalar_prefetch = 0 : i64, scratch_operands = 0 : i64, tpu.core_type = #tpu.core_type<tc>, window_params = [{transform_indices = @transform_0, window_bounds = array<i64: 32, 128>}, {transform_indices = @transform_1, window_bounds = array<i64: 32, 128>}, {transform_indices = @transform_2, window_bounds = array<i64: 32, 128>}, {transform_indices = @transform_3, window_bounds = array<i64: 1, 1>}]} {
    %c0 = arith.constant 0 : index
    %c0_0 = arith.constant 0 : index
    %0 = vector.load %arg1[%c0, %c0_0] : memref<32x128xf32, #tpu.memory_space<vmem>>, vector<32x128xf32>
    %c0_1 = arith.constant 0 : index
    %c0_2 = arith.constant 0 : index
    %1 = vector.load %arg2[%c0_1, %c0_2] : memref<32x128xf32, #tpu.memory_space<vmem>>, vector<32x128xf32>
    %c0_3 = arith.constant 0 : index
    %c0_4 = arith.constant 0 : index
    %2 = vector.load %arg3[%c0_3, %c0_4] : memref<32x128xi8, #tpu.memory_space<vmem>>, vector<32x128xi8>
    %3 = arith.extsi %2 : vector<32x128xi8> to vector<32x128xi32>
    %c0_i32 = arith.constant 0 : i32
    %4 = vector.broadcast %c0_i32 : i32 to vector<32x128xi32>
    %5 = arith.cmpi eq, %3, %4 : vector<32x128xi32>
    %6 = arith.subf %1, %0 : vector<32x128xf32>
    %cst = arith.constant 0.000000e+00 : f32
    %7 = vector.broadcast %cst : f32 to vector<32x128xf32>
    %8 = arith.subf %7, %6 : vector<32x128xf32>
    %9 = arith.select %5, %6, %8 : vector<32x128xi1>, vector<32x128xf32>
    %10 = math.absf %9 : vector<32x128xf32>
    %cst_5 = arith.constant 0.000000e+00 : f32
    %11 = vector.broadcast %cst_5 : f32 to vector<32x128xf32>
    %12 = arith.subf %11, %10 : vector<32x128xf32>
    %13 = math.exp %12 : vector<32x128xf32>
    %cst_6 = arith.constant 0.000000e+00 : f32
    %14 = vector.broadcast %cst_6 : f32 to vector<32x128xf32>
    %15 = arith.maximumf %9, %14 : vector<32x128xf32>
    %cst_7 = arith.constant 1.000000e+00 : f32
    %16 = vector.broadcast %cst_7 : f32 to vector<32x128xf32>
    %17 = arith.addf %16, %13 : vector<32x128xf32>
    %18 = math.log %17 : vector<32x128xf32>
    %19 = arith.addf %15, %18 : vector<32x128xf32>
    %cst_8 = arith.constant 0.000000e+00 : f32
    %20 = vector.broadcast %cst_8 : f32 to vector<32x128xf32>
    %21 = arith.cmpf oge, %9, %20 : vector<32x128xf32>
    %cst_9 = arith.constant 1.000000e+00 : f32
    %22 = vector.broadcast %cst_9 : f32 to vector<32x128xf32>
    %23 = arith.select %21, %22, %13 : vector<32x128xi1>, vector<32x128xf32>
    %cst_10 = arith.constant 1.000000e+00 : f32
    %24 = vector.broadcast %cst_10 : f32 to vector<32x128xf32>
    %25 = arith.addf %24, %13 : vector<32x128xf32>
    %26 = arith.divf %23, %25 : vector<32x128xf32>
    %cst_11 = arith.constant 2.500000e-01 : f32
    %cst_12 = arith.constant 7.500000e-01 : f32
    %27 = vector.broadcast %cst_11 : f32 to vector<32x128xf32>
    %28 = vector.broadcast %cst_12 : f32 to vector<32x128xf32>
    %29 = arith.select %5, %27, %28 : vector<32x128xi1>, vector<32x128xf32>
    %30 = arith.mulf %26, %26 : vector<32x128xf32>
    %31 = arith.mulf %29, %30 : vector<32x128xf32>
    %32 = arith.mulf %31, %19 : vector<32x128xf32>
    %c0_i32_13 = arith.constant 0 : i32
    %33 = vector.broadcast %c0_i32_13 : i32 to vector<32x128xi32>
    %34 = arith.cmpi sge, %3, %33 : vector<32x128xi32>
    %cst_14 = arith.constant 0.000000e+00 : f32
    %35 = vector.broadcast %cst_14 : f32 to vector<32x128xf32>
    %36 = arith.select %34, %32, %35 : vector<32x128xi1>, vector<32x128xf32>
    %37 = vector.shape_cast %36 : vector<32x128xf32> to vector<1x32x128xf32>
    %cst_15 = arith.constant dense<0.000000e+00> : vector<1xf32>
    %38 = vector.multi_reduction <add>, %37, %cst_15 [1, 2] : vector<1x32x128xf32> to vector<1xf32>
    %39 = vector.shape_cast %38 : vector<1xf32> to vector<1x1x1xf32>
    %40 = vector.extract %39[0, 0, 0] : f32 from vector<1x1x1xf32>
    %41 = arith.index_cast %arg0 : i32 to index
    %c0_16 = arith.constant 0 : index
    %42 = memref.load %arg4[%41, %c0_16] : memref<1x1xf32, #tpu.memory_space<smem>>
    memref.store %40, %arg4[%41, %c0_16] : memref<1x1xf32, #tpu.memory_space<smem>>
    return
  }
  func.func @transform_0(%arg0: i32) -> (i32, i32) {
    %c0_i32 = arith.constant 0 : i32
    %c0_i32_0 = arith.constant 0 : i32
    return %arg0, %c0_i32 : i32, i32
  }
  func.func @transform_1(%arg0: i32) -> (i32, i32) {
    %c0_i32 = arith.constant 0 : i32
    %c0_i32_0 = arith.constant 0 : i32
    return %arg0, %c0_i32 : i32, i32
  }
  func.func @transform_2(%arg0: i32) -> (i32, i32) {
    %c0_i32 = arith.constant 0 : i32
    %c0_i32_0 = arith.constant 0 : i32
    return %arg0, %c0_i32 : i32, i32
  }
  func.func @transform_3(%arg0: i32) -> (i32, i32) {
    %c0_i32 = arith.constant 0 : i32
    %c0_i32_0 = arith.constant 0 : i32
    %c0_i32_1 = arith.constant 0 : i32
    return %c0_i32, %c0_i32_0 : i32, i32
  }
}

</mosaic_0001>

<bundles_post_ra>
// kernel: tpu_custom_call.1
= control target key start
LH: loop header
LB: loop body
LE: loop exit
PB: predicated region body
PF: predicated region fallthrough
CT: control target
= control target key end

     0   :  { %8 = vsyncpa [#allocation3], 0  ;;  %s460_s0 = inlined_call_operand.hbm [shape: f32[32,128], index: 0, kind: input, shape index: {}]   ;;  %s461_s1 = inlined_call_operand.hbm [shape: f32[32,128], index: 1, kind: input, shape index: {}]   ;;  %s462_s2 = inlined_call_operand.hbm [shape: s8[32,128], index: 2, kind: input, shape index: {}]   ;;  %s463_s3 = inlined_call_operand.hbm [shape: f32[1,1], index: 3, kind: output, shape index: {}]  }
   0x1   :  { %9 = vsyncpa [#allocation6], 0 }
   0x2   :  { %10 = vsyncpa [#allocation4], 0  ;;  %s304_s12 = smov [#allocation5]   ;;  %s305_s14 = smov [#allocation2]  }
   0x3   :  { %s28_s13 = sshll.u32 %s304_s12, 4  ;;  %s16_s15 = sshll.u32 %s305_s14, 4  ;;  %s29_s13 = int_to_ptr.vmem [resolvable:$true] %s28_s13  ;;  %s331_s15 = int_to_ptr.vmem [resolvable:$true] %s16_s15 }
   0x4   :  { %s222_s18 = scalar_lea.hbm %s461_s1, 512 }
   0x5   :  { %p223_p0 = scmp.ne.s32.totalorder %s461_s1, %s222_s18  ;;  %p226_p1 = scmp.lt.u32.totalorder %s222_s18, %s461_s1 }
   0x7   :  { %p228_p2 = pnand %p226_p1, %p223_p0 }
   0x9   :  { %231 = shalt.err (!%p228_p2)
}
   0xa   :  { %s232_s23 = scalar_lea.vmem %s29_s13, 512  ;;  %p237_p4 = scmp.lt.s32.totalorder %s29_s13, %s29_s13 }
   0xb   :  { %p233_p3 = scmp.ne.s32.totalorder %s29_s13, %s232_s23  ;;  %p238_p5 = scmp.lt.s32.totalorder %s232_s23, %s232_s23 }
   0xd   :  { %p239_p6 = por %p238_p5, %p237_p4 }
   0xf   :  { %p240_p7 = pnand %p239_p6, %p233_p3 }
  0x11   :  { %243 = shalt.err (!%p240_p7)
}
  0x12   :  { %s306_s24 = smov 128   ;;  %s307_s25 = smov 8  }
  0x13   :  { %34 = dma.hbm_to_vmem [thread:$0]  %s461_s1, 512, %s29_s13, [#allocation6], %s306_s24, %s306_s24, %s307_s25  }
  0x14   :  { %s244_s30 = scalar_lea.hbm %s460_s0, 512 }
  0x15   :  { %p245_p8 = scmp.ne.s32.totalorder %s460_s0, %s244_s30  ;;  %p248_p9 = scmp.lt.u32.totalorder %s244_s30, %s460_s0 }
  0x17   :  { %p250_p10 = pnand %p248_p9, %p245_p8 }
  0x19   :  { %253 = shalt.err (!%p250_p10)
}
  0x1a   :  { %s254_s8 = scalar_lea.vmem %s331_s15, 512  ;;  %p259_p12 = scmp.lt.s32.totalorder %s331_s15, %s331_s15 }
  0x1b   :  { %p255_p11 = scmp.ne.s32.totalorder %s331_s15, %s254_s8  ;;  %p260_p13 = scmp.lt.s32.totalorder %s254_s8, %s254_s8 }
  0x1d   :  { %p261_p0 = por %p260_p13, %p259_p12 }
  0x1f   :  { %p262_p1 = pnand %p261_p0, %p255_p11 }
  0x21   :  { %265 = shalt.err (!%p262_p1)
}
  0x22   :  { %22 = dma.hbm_to_vmem [thread:$0]  %s460_s0, 512, %s331_s15, [#allocation3], %s306_s24, %s306_s24, %s307_s25  }
  0x23   :  { %s308_s10 = smov [#allocation7]   ;;  %s266_s14 = scalar_lea.hbm %s462_s2, 128 }
  0x24   :  { %s41_s11 = sshll.u32 %s308_s10, 4  ;;  %p267_p2 = scmp.ne.s32.totalorder %s462_s2, %s266_s14  ;;  %s42_s11 = int_to_ptr.vmem [resolvable:$true] %s41_s11 }
  0x25   :  { %p270_p3 = scmp.lt.u32.totalorder %s266_s14, %s462_s2 }
  0x27   :  { %p272_p4 = pnand %p270_p3, %p267_p2 }
  0x29   :  { %275 = shalt.err (!%p272_p4)
}
  0x2a   :  { %s276_s20 = scalar_lea.vmem %s42_s11, 128  ;;  %p281_p6 = scmp.lt.s32.totalorder %s42_s11, %s42_s11 }
  0x2b   :  { %p277_p5 = scmp.ne.s32.totalorder %s42_s11, %s276_s20  ;;  %p282_p7 = scmp.lt.s32.totalorder %s276_s20, %s276_s20 }
  0x2d   :  { %p283_p8 = por %p282_p7, %p281_p6 }
  0x2f   :  { %p284_p9 = pnand %p283_p8, %p277_p5 }
  0x31   :  { %287 = shalt.err (!%p284_p9)
}
  0x32   :  { %44 = dma.hbm_to_vmem [thread:$0]  %s462_s2, 128, %s42_s11, [#allocation6]  }
  0x33   :  { %298 = dma.done.wait [#allocation3], 512  }
  0x34   :  { %299 = vsyncadd [#allocation3], 4294966784 }
  0x35   :  { %300 = dma.done.wait [#allocation6], 640  }
  0x36   :  { %301 = vsyncadd [#allocation6], 4294966656  ;;  %v54_v0 = vld [vmem:[#allocation2] sm:$0xff]  ;;  %v55_v1 = vld [vmem:[#allocation2 + $0x8] sm:$0xff]  ;;  %s288_s23 = scalar_lea.hbm %s463_s3, 16 }
  0x37   :  { %v56_v2 = vld [vmem:[#allocation2 + $0x10] sm:$0xff]  ;;  %v57_v3 = vld [vmem:[#allocation2 + $0x18] sm:$0xff]  ;;  %v58_v4 = vld [vmem:[#allocation5] sm:$0xff]  ;;  %p289_p10 = scmp.ne.s32.totalorder %s463_s3, %s288_s23  ;;  %p292_p11 = scmp.lt.u32.totalorder %s288_s23, %s463_s3 }
  0x38   :  { %v59_v5 = vld [vmem:[#allocation5 + $0x8] sm:$0xff]  ;;  %v60_v6 = vld [vmem:[#allocation5 + $0x10] sm:$0xff]  ;;  %v61_v7 = vld [vmem:[#allocation5 + $0x18] sm:$0xff]  ;;  %v71_v9 = vsub.f32 %v58_v4, %v54_v0 }
  0x39   :  { %v374_v8 = vld [vmem:[#allocation7] sm:$0xff]  ;;  %v72_v10 = vsub.f32 %v59_v5, %v55_v1  ;;  %v73_v15 = vsub.f32 %v60_v6, %v56_v2  ;;  %v74_v16 = vsub.f32 %v61_v7, %v57_v3  ;;  %v309_v6 = vmov 0.75   ;;  %p294_p12 = pnand %p292_p11, %p289_p10 }
  0x3a   :  { %v63_v11 = vunpack.c.0.s8 %v374_v8  ;;  %v64_v12 = vunpack.c.1.s8 %v374_v8  ;;  %v65_v13 = vunpack.c.2.s8 %v374_v8  ;;  %v66_v14 = vunpack.c.3.s8 %v374_v8 }
  0x3b   :  { %v75_v17 = vsub.f32 0.0, %v71_v9  ;;  %v76_v18 = vsub.f32 0.0, %v72_v10  ;;  %v77_v23 = vsub.f32 0.0, %v73_v15  ;;  %v78_v24 = vsub.f32 0.0, %v74_v16 }
  0x3c   :  { %vm382_vm0 = vcmp.eq.s32.totalorder %v63_v11, 0  ;;  %vm388_vm1 = vcmp.eq.s32.totalorder %v64_v12, 0  ;;  %vm394_vm2 = vcmp.eq.s32.totalorder %v65_v13, 0  ;;  %vm400_vm3 = vcmp.eq.s32.totalorder %v66_v14, 0 }
  0x3d   :  { %v406_v25 = vsel %vm382_vm0, %v71_v9, %v75_v17  ;;  %v410_v26 = vsel %vm388_vm1, %v72_v10, %v76_v18  ;;  %v416_v29 = vsel %vm394_vm2, %v73_v15, %v77_v23  ;;  %v420_v30 = vsel %vm400_vm3, %v74_v16, %v78_v24 }
  0x3e   :  { %v83_v27 = vand.u32 2147483647, %v406_v25  ;;  %v84_v28 = vand.u32 2147483647, %v410_v26  ;;  %v85_v31 = vand.u32 2147483647, %v416_v29 }
  0x3f   :  { %v86_v32 = vand.u32 2147483647, %v420_v30  ;;  %vm119_vm4 = vcmp.ge.f32.partialorder %v406_v25, 0.0  ;;  %vm120_vm5 = vcmp.ge.f32.partialorder %v410_v26, 0.0  ;;  %vm121_vm6 = vcmp.ge.f32.partialorder %v416_v29, 0.0 }
  0x40   :  { %v87_v33 = vsub.f32 0.0, %v83_v27  ;;  %v88_v34 = vsub.f32 0.0, %v84_v28  ;;  %v89_v35 = vsub.f32 0.0, %v85_v31  ;;  %vm122_vm7 = vcmp.ge.f32.partialorder %v420_v30, 0.0 }
  0x41   :  { %v90_v36 = vsub.f32 0.0, %v86_v32  ;;  %v99_v54 = vmax.f32 %v406_v25, 0.0  ;;  %v100_v58 = vmax.f32 %v410_v26, 0.0  ;;  %v101_v62 = vmax.f32 %v416_v29, 0.0 }
  0x42   :  { %v91_v37 = vmul.f32 1.442695, %v87_v33  ;;  %v93_v38 = vmul.f32 1.442695, %v88_v34  ;;  %v95_v39 = vmul.f32 1.442695, %v89_v35 }
  0x43   :  { %v97_v40 = vmul.f32 1.442695, %v90_v36  ;;  %v102_v3 = vmax.f32 %v420_v30, 0.0  ;;  %v135_v7 = vsel %vm382_vm0, 0.25, %v309_v6  ;;  %v136_v16 = vsel %vm388_vm1, 0.25, %v309_v6 }
  0x44   :  { %198 = vpow2.f32 %v91_v37  ;;  %v137_v24 = vsel %vm394_vm2, 0.25, %v309_v6  ;;  %v138_v27 = vsel %vm400_vm3, 0.25, %v309_v6  ;;  %vm151_vm8 = vcmp.ge.s32.totalorder %v63_v11, 0 }
  0x45   :  { %200 = vpow2.f32 %v93_v38  ;;  %vm152_vm9 = vcmp.ge.s32.totalorder %v64_v12, 0  ;;  %vm153_vm10 = vcmp.ge.s32.totalorder %v65_v13, 0  ;;  %vm154_vm11 = vcmp.ge.s32.totalorder %v66_v14, 0 }
  0x46   :  { %202 = vpow2.f32 %v95_v39 }
  0x47   :  { %204 = vpow2.f32 %v97_v40 }
  0x4e   :  { %v199_v41 = vpop.eup %198 }
  0x4f   :  { %v201_v42 = vpop.eup %200  ;;  %v103_v43 = vadd.f32 1.0, %v199_v41  ;;  %v123_v52 = vsel %vm119_vm4, 1.0, %v199_v41 }
  0x50   :  { %v203_v44 = vpop.eup %202  ;;  %v104_v45 = vadd.f32 1.0, %v201_v42  ;;  %v124_v56 = vsel %vm120_vm5, 1.0, %v201_v42 }
  0x51   :  { %v205_v46 = vpop.eup %204  ;;  %v105_v47 = vadd.f32 1.0, %v203_v44  ;;  %206 = vlog2.f32 %v103_v43  ;;  %v125_v60 = vsel %vm121_vm6, 1.0, %v203_v44 }
  0x52   :  { %v106_v48 = vadd.f32 1.0, %v205_v46  ;;  %208 = vlog2.f32 %v104_v45  ;;  %v126_v0 = vsel %vm122_vm7, 1.0, %v205_v46 }
  0x53   :  { %210 = vlog2.f32 %v105_v47 }
  0x54   :  { %212 = vlog2.f32 %v106_v48 }
  0x55   :  { %214 = vrcp.f32 %v103_v43 }
  0x56   :  { %216 = vrcp.f32 %v104_v45 }
  0x57   :  { %218 = vrcp.f32 %v105_v47 }
  0x58   :  { %220 = vrcp.f32 %v106_v48 }
  0x5b   :  { %v207_v49 = vpop.eup %206 }
  0x5c   :  { %v209_v50 = vpop.eup %208  ;;  %v108_v55 = vmul.f32 0.6931472, %v207_v49 }
  0x5d   :  { %v211_v51 = vpop.eup %210  ;;  %v110_v59 = vmul.f32 0.6931472, %v209_v50 }
  0x5e   :  { %v213_v53 = vpop.eup %212  ;;  %v112_v63 = vmul.f32 0.6931472, %v211_v51  ;;  %v115_v10 = vadd.f32 %v108_v55, %v99_v54 }
  0x5f   :  { %v215_v57 = vpop.eup %214  ;;  %v114_v4 = vmul.f32 0.6931472, %v213_v53  ;;  %v116_v18 = vadd.f32 %v110_v59, %v100_v58 }
  0x60   :  { %v217_v61 = vpop.eup %216  ;;  %v128_v1 = vmul.f32 %v215_v57, %v123_v52  ;;  %v117_v26 = vadd.f32 %v112_v63, %v101_v62 }
  0x61   :  { %v219_v2 = vpop.eup %218  ;;  %v130_v5 = vmul.f32 %v217_v61, %v124_v56  ;;  %v118_v29 = vadd.f32 %v114_v4, %v102_v3 }
  0x62   :  { %v221_v9 = vpop.eup %220  ;;  %v132_v15 = vmul.f32 %v219_v2, %v125_v60  ;;  %v139_v17 = vmul.f32 %v128_v1, %v128_v1 }
  0x63   :  { %v134_v23 = vmul.f32 %v221_v9, %v126_v0  ;;  %v140_v25 = vmul.f32 %v130_v5, %v130_v5 }
  0x64   :  { %v141_v28 = vmul.f32 %v132_v15, %v132_v15  ;;  %v143_v19 = vmul.f32 %v139_v17, %v135_v7 }
  0x65   :  { %v142_v30 = vmul.f32 %v134_v23, %v134_v23  ;;  %v144_v31 = vmul.f32 %v140_v25, %v136_v16 }
  0x66   :  { %v145_v20 = vmul.f32 %v141_v28, %v137_v24  ;;  %v147_v32 = vmul.f32 %v143_v19, %v115_v10 }
  0x67   :  { %v146_v21 = vmul.f32 %v142_v30, %v138_v27  ;;  %v148_v33 = vmul.f32 %v144_v31, %v116_v18 }
  0x68   :  { %v149_v22 = vmul.f32 %v145_v20, %v117_v26  ;;  %v155_v34 = vsel %vm151_vm8, %v147_v32, 0.0 }
  0x69   :  { %v150_v35 = vmul.f32 %v146_v21, %v118_v29  ;;  %v156_v36 = vsel %vm152_vm9, %v148_v33, 0.0 }
  0x6a   :  { %v157_v37 = vsel %vm153_vm10, %v149_v22, 0.0  ;;  %v159_v38 = vadd.f32 %v156_v36, %v155_v34 }
  0x6b   :  { %v158_v11 = vsel %vm154_vm11, %v150_v35, 0.0 }
  0x6c   :  { %v160_v39 = vadd.f32 %v159_v38, %v157_v37 }
  0x6e   :  { %v161_v40 = vadd.f32 %v160_v39, %v158_v11 }
  0x70   :  { %162 = vadd.xlane.f32.xlu0 %v161_v40 }
  0xfd   :  { %v163_v41 = vpop.xlane.xlu0 %162 }
  0xfe   :  { %v164_v12 = vrot.slane %v163_v41, 4 }
 0x100   :  { %v165_v42 = vadd.f32 %v164_v12, %v163_v41 }
 0x102   :  { %v166_v43 = vrot.slane %v165_v42, 2 }
 0x104   :  { %v167_v44 = vadd.f32 %v166_v43, %v165_v42 }
 0x106   :  { %v168_v45 = vrot.slane %v167_v44, 1 }
 0x108   :  { %v169_v13 = vadd.f32 %v168_v45, %v167_v44 }
 0x10a   :  { %189 = vpush %v169_v13 }
 0x13b   :  { %s190_s2 = spop %189 }
 0x13c   :  { %173 = sst [smem:[#allocation8]] %s190_s2 }
 0x13d   :  { %297 = shalt.err (!%p294_p12)
}
 0x13e   :  { %s310_s28 = smov [#allocation8]  }
 0x13f   :  { %181 = dma.smem_to_hbm %s310_s28, 16, %s463_s3, [#allocation4]  }
 0x140   :  { %302 = dma.done.wait [#allocation4], 16  }
 0x141   :  { %303 = vsyncadd [#allocation4], 4294967280 }
 0x142   :  { %185 = sfence }
 0x143   :  { %186 = vsyncpa [#allocation3], 1 }
 0x144   :  { %187 = vsyncpa [#allocation6], 1 }
 0x145   :  { %188 = vsyncpa [#allocation4], 1 }

</bundles_post_ra>
